<compile_context>
chip_gen: v5e
topology: v5e:2x2
jax: 0.10.0
libtpu: 0.0.40
codegen_flags: <defaults>
</compile_context>

<pallas_src>
import functools
import math

import numpy as np
import jax
import jax.numpy as jnp
from jax.experimental import pallas as pl
from jax.experimental.pallas import tpu as pltpu


def _fused_residual_block_kernel(x_ref, w1_ref, w2_ref, o_ref, buf_ref, m_ref,
                                 *, H, W, KH, KW, pad, off):
    """out = ReLU(conv2(ReLU(conv1(x))) + x) for one batch element, (C, H*W) layout."""
    C = x_ref.shape[1]
    HW = H * W

    # Column index of every flattened pixel; used to mask taps that would read
    # across a row boundary (i.e. the left/right zero padding of the conv).
    col = jax.lax.broadcasted_iota(jnp.int32, (C, HW), dimension=1) % W

    # Zero the halo once; the interior is fully overwritten before each conv,
    # and the halo region is never written, so it stays zero for both convs.
    buf_ref[...] = jnp.zeros(buf_ref.shape, buf_ref.dtype)

    def conv(src, w_ref):
        # Place the image in the zero-haloed flat buffer (lane-aligned store).
        buf_ref[:, off:off + HW] = src
        # im2col: row block t of m holds the image shifted by tap t's offset.
        for kh in range(KH):
            for kw in range(KW):
                dh, dw = kh - pad, kw - pad
                s = dh * W + dw
                tap = buf_ref[:, off + s:off + s + HW]          # (C, H*W)
                if dw > 0:      # tap reads into the next image row -> mask right edge
                    tap = jnp.where(col < (W - dw), tap, 0.0)
                elif dw < 0:    # tap reads into the previous image row -> mask left edge
                    tap = jnp.where(col >= (-dw), tap, 0.0)
                r = (kh * KW + kw) * C
                m_ref[r:r + C, :] = tap
        # Single (Cout, KH*KW*Cin) x (KH*KW*Cin, H*W) MXU matmul.
        return jax.lax.dot_general(
            w_ref[...], m_ref[...],
            dimension_numbers=(((1,), (0,)), ((), ())),
            preferred_element_type=jnp.float32)

    x = x_ref[0].astype(jnp.float32)                 # (C, H*W), residual source
    h1 = jnp.maximum(conv(x, w1_ref), 0.0)           # ReLU(conv1(x))
    out = jnp.maximum(conv(h1, w2_ref) + x, 0.0)     # ReLU(conv2(h1) + x)
    o_ref[...] = out[None].astype(o_ref.dtype)


def residual_block_forward(inp_nchw, w1_oihw, w2_oihw, padding=1):
    """Forward pass of ResidualBlock (norm='none').  Input/output are NCHW.

    conv: num_c -> num_c, stride=1, zero padding, bias=False (the PyTorch module
    uses bias=False whenever `norm` is a non-empty string, which it always is).
    """
    N, C, H, W = inp_nchw.shape
    Cout, Cin, KH, KW = w1_oihw.shape
    assert Cout == C and Cin == C and w2_oihw.shape == w1_oihw.shape
    # stride=1 / "same" spatial size is required by the residual add anyway.
    assert H + 2 * padding - KH + 1 == H and W + 2 * padding - KW + 1 == W

    HW = H * W
    K = KH * KW * Cin

    # Lane-aligned halo offset inside the flat scratch buffer; must cover the
    # largest flattened tap shift (pad rows + pad cols).
    off = 128
    max_shift = max(padding * W + padding,
                    (KH - 1 - padding) * W + (KW - 1 - padding))
    assert max_shift <= off, "halo offset too small for this kernel size"

    # NCHW -> (N, C, H*W): a free, contiguous reshape (no NHWC transpose).
    x_flat = inp_nchw.reshape(N, C, HW)
    # OIHW -> (Cout, KH*KW*Cin), matching the kh-major / kw / ci im2col row order.
    w1_mat = jnp.transpose(w1_oihw, (0, 2, 3, 1)).reshape(Cout, K)
    w2_mat = jnp.transpose(w2_oihw, (0, 2, 3, 1)).reshape(Cout, K)

    kernel = functools.partial(
        _fused_residual_block_kernel,
        H=H, W=W, KH=KH, KW=KW, pad=padding, off=off)

    out_flat = pl.pallas_call(
        kernel,
        out_shape=jax.ShapeDtypeStruct((N, C, HW), inp_nchw.dtype),
        grid_spec=pltpu.PrefetchScalarGridSpec(
            num_scalar_prefetch=0,
            grid=(N,),   # batch axis; "parallel" feeds both TensorCores on v7x
            in_specs=[
                pl.BlockSpec((1, C, HW), lambda n: (n, 0, 0)),
                pl.BlockSpec((Cout, K), lambda n: (0, 0)),   # VMEM-resident weights
                pl.BlockSpec((Cout, K), lambda n: (0, 0)),
            ],
            out_specs=pl.BlockSpec((1, C, HW), lambda n: (n, 0, 0)),
            scratch_shapes=[
                pltpu.VMEM((C, HW + 2 * off), jnp.float32),  # zero-haloed flat image
                pltpu.VMEM((K, HW), jnp.float32),            # im2col matrix
            ],
        ),
        compiler_params=pltpu.CompilerParams(
            dimension_semantics=("parallel",)),
    )(x_flat, w1_mat, w2_mat)

    return out_flat.reshape(N, C, H, W)


def _reference_forward(inp_nchw, w1_oihw, w2_oihw, padding=1):
    """Pure-JAX (lax.conv) reference matching the PyTorch module."""
    def conv(x, w):
        return jax.lax.conv_general_dilated(
            x, w, window_strides=(1, 1),
            padding=((padding, padding), (padding, padding)),
            dimension_numbers=("NCHW", "OIHW", "NCHW"))
    h1 = jnp.maximum(conv(inp_nchw, w1_oihw), 0.0)
    return jnp.maximum(conv(h1, w2_oihw) + inp_nchw, 0.0)


if __name__ == "__main__":
    # Module config: num_c=4, kernel_size=3, stride=1, padding=1, norm='none'
    N, C, H, W = 2, 4, 16, 16
    Kk = 3
    PAD = 1

    key = jax.random.PRNGKey(0)
    kx, kw1, kw2 = jax.random.split(key, 3)

    x = jax.random.normal(kx, (N, C, H, W), dtype=jnp.float32)

    # nn.init.uniform_(weight, -w_scale, w_scale) with w_scale = sqrt(1/num_c)
    w_scale = math.sqrt(1.0 / C)
    w1 = jax.random.uniform(kw1, (C, C, Kk, Kk), dtype=jnp.float32,
                            minval=-w_scale, maxval=w_scale)     # OIHW
    w2 = jax.random.uniform(kw2, (C, C, Kk, Kk), dtype=jnp.float32,
                            minval=-w_scale, maxval=w_scale)     # OIHW

    out = residual_block_forward(x, w1, w2, padding=PAD)
    out = jax.block_until_ready(out)

    ref = jax.block_until_ready(_reference_forward(x, w1, w2, padding=PAD))
    np.testing.assert_allclose(np.asarray(out), np.asarray(ref), rtol=1e-5, atol=1e-5)

    print("KERNEL_OK")
</pallas_src>

<mosaic_0001>
module attributes {stable_mosaic.version = 11 : i64} {
  func.func @_fused_residual_block_kernel(%arg0: i32, %arg1: memref<1x4x256xf32, #tpu.memory_space<vmem>>, %arg2: memref<4x36xf32, #tpu.memory_space<vmem>>, %arg3: memref<4x36xf32, #tpu.memory_space<vmem>>, %arg4: memref<1x4x256xf32, #tpu.memory_space<vmem>>, %arg5: memref<4x512xf32, #tpu.memory_space<vmem>>, %arg6: memref<36x256xf32, #tpu.memory_space<vmem>>) attributes {dimension_semantics = [#tpu.dimension_semantics<parallel>], iteration_bounds = array<i64: 2>, scalar_prefetch = 0 : i64, scratch_operands = 2 : i64, tpu.core_type = #tpu.core_type<tc>, window_params = [{transform_indices = @transform_0, window_bounds = array<i64: 1, 4, 256>}, {pipeline_mode = #tpu.pipeline_mode<synchronous>, transform_indices = @transform_1, window_bounds = array<i64: 4, 36>}, {pipeline_mode = #tpu.pipeline_mode<synchronous>, transform_indices = @transform_2, window_bounds = array<i64: 4, 36>}, {transform_indices = @transform_3, window_bounds = array<i64: 1, 4, 256>}]} {
    %0 = tpu.iota {dimensions = array<i32: 1>} : vector<4x256xi32>
    %c16_i32 = arith.constant 16 : i32
    %c0_i32 = arith.constant 0 : i32
    %1 = arith.cmpi eq, %c16_i32, %c0_i32 : i32
    %c1_i32 = arith.constant 1 : i32
    %2 = arith.select %1, %c1_i32, %c16_i32 : i32
    %3 = vector.broadcast %2 : i32 to vector<4x256xi32>
    %4 = arith.remsi %0, %3 : vector<4x256xi32>
    %c0_i32_0 = arith.constant 0 : i32
    %5 = vector.broadcast %c0_i32_0 : i32 to vector<4x256xi32>
    %6 = arith.cmpi ne, %4, %5 : vector<4x256xi32>
    %c0_i32_1 = arith.constant 0 : i32
    %7 = vector.broadcast %c0_i32_1 : i32 to vector<4x256xi32>
    %8 = arith.cmpi slt, %4, %7 : vector<4x256xi32>
    %c0_i32_2 = arith.constant 0 : i32
    %9 = arith.cmpi slt, %2, %c0_i32_2 : i32
    %10 = vector.broadcast %9 : i1 to vector<4x256xi1>
    %11 = vector.broadcast %10 : vector<4x256xi1> to vector<4x256xi1>
    %12 = arith.xori %8, %11 : vector<4x256xi1>
    %13 = arith.andi %12, %6 : vector<4x256xi1>
    %14 = vector.broadcast %2 : i32 to vector<4x256xi32>
    %15 = arith.addi %4, %14 : vector<4x256xi32>
    %16 = arith.select %13, %15, %4 : vector<4x256xi1>, vector<4x256xi32>
    %cst = arith.constant 0.000000e+00 : f32
    %17 = vector.broadcast %cst : f32 to vector<4x512xf32>
    %c0 = arith.constant 0 : index
    %c0_3 = arith.constant 0 : index
    %18 = vector.load %arg5[%c0, %c0_3] : memref<4x512xf32, #tpu.memory_space<vmem>>, vector<4x512xf32>
    tpu.vector_store %arg5[%c0, %c0_3], %17 {strides = array<i32>} : memref<4x512xf32, #tpu.memory_space<vmem>>, vector<4x512xf32>,
    %c0_4 = arith.constant 0 : index
    %c0_5 = arith.constant 0 : index
    %c0_6 = arith.constant 0 : index
    %19 = vector.load %arg1[%c0_4, %c0_5, %c0_6] : memref<1x4x256xf32, #tpu.memory_space<vmem>>, vector<1x4x256xf32>
    %20 = vector.shape_cast %19 : vector<1x4x256xf32> to vector<4x256xf32>
    %c0_7 = arith.constant 0 : index
    %c128 = arith.constant 128 : index
    %21 = vector.load %arg5[%c0_7, %c128] : memref<4x512xf32, #tpu.memory_space<vmem>>, vector<4x256xf32>
    tpu.vector_store %arg5[%c0_7, %c128], %20 {strides = array<i32>} : memref<4x512xf32, #tpu.memory_space<vmem>>, vector<4x256xf32>,
    %c0_8 = arith.constant 0 : index
    %c111 = arith.constant 111 : index
    %22 = vector.load %arg5[%c0_8, %c111] : memref<4x512xf32, #tpu.memory_space<vmem>>, vector<4x256xf32>
    %c1_i32_9 = arith.constant 1 : i32
    %23 = vector.broadcast %c1_i32_9 : i32 to vector<4x256xi32>
    %24 = arith.cmpi sge, %16, %23 : vector<4x256xi32>
    %cst_10 = arith.constant 0.000000e+00 : f32
    %25 = vector.broadcast %cst_10 : f32 to vector<4x256xf32>
    %26 = arith.select %24, %22, %25 : vector<4x256xi1>, vector<4x256xf32>
    %c0_11 = arith.constant 0 : index
    %c0_12 = arith.constant 0 : index
    %27 = vector.load %arg6[%c0_11, %c0_12] : memref<36x256xf32, #tpu.memory_space<vmem>>, vector<4x256xf32>
    tpu.vector_store %arg6[%c0_11, %c0_12], %26 {strides = array<i32>} : memref<36x256xf32, #tpu.memory_space<vmem>>, vector<4x256xf32>,
    %c0_13 = arith.constant 0 : index
    %c112 = arith.constant 112 : index
    %28 = vector.load %arg5[%c0_13, %c112] : memref<4x512xf32, #tpu.memory_space<vmem>>, vector<4x256xf32>
    %c4 = arith.constant 4 : index
    %c0_14 = arith.constant 0 : index
    %29 = vector.load %arg6[%c4, %c0_14] : memref<36x256xf32, #tpu.memory_space<vmem>>, vector<4x256xf32>
    tpu.vector_store %arg6[%c4, %c0_14], %28 {strides = array<i32>} : memref<36x256xf32, #tpu.memory_space<vmem>>, vector<4x256xf32>,
    %c0_15 = arith.constant 0 : index
    %c113 = arith.constant 113 : index
    %30 = vector.load %arg5[%c0_15, %c113] : memref<4x512xf32, #tpu.memory_space<vmem>>, vector<4x256xf32>
    %c15_i32 = arith.constant 15 : i32
    %31 = vector.broadcast %c15_i32 : i32 to vector<4x256xi32>
    %32 = arith.cmpi slt, %16, %31 : vector<4x256xi32>
    %cst_16 = arith.constant 0.000000e+00 : f32
    %33 = vector.broadcast %cst_16 : f32 to vector<4x256xf32>
    %34 = arith.select %32, %30, %33 : vector<4x256xi1>, vector<4x256xf32>
    %c8 = arith.constant 8 : index
    %c0_17 = arith.constant 0 : index
    %35 = vector.load %arg6[%c8, %c0_17] : memref<36x256xf32, #tpu.memory_space<vmem>>, vector<4x256xf32>
    tpu.vector_store %arg6[%c8, %c0_17], %34 {strides = array<i32>} : memref<36x256xf32, #tpu.memory_space<vmem>>, vector<4x256xf32>,
    %c0_18 = arith.constant 0 : index
    %c127 = arith.constant 127 : index
    %36 = vector.load %arg5[%c0_18, %c127] : memref<4x512xf32, #tpu.memory_space<vmem>>, vector<4x256xf32>
    %c1_i32_19 = arith.constant 1 : i32
    %37 = vector.broadcast %c1_i32_19 : i32 to vector<4x256xi32>
    %38 = arith.cmpi sge, %16, %37 : vector<4x256xi32>
    %cst_20 = arith.constant 0.000000e+00 : f32
    %39 = vector.broadcast %cst_20 : f32 to vector<4x256xf32>
    %40 = arith.select %38, %36, %39 : vector<4x256xi1>, vector<4x256xf32>
    %c12 = arith.constant 12 : index
    %c0_21 = arith.constant 0 : index
    %41 = vector.load %arg6[%c12, %c0_21] : memref<36x256xf32, #tpu.memory_space<vmem>>, vector<4x256xf32>
    tpu.vector_store %arg6[%c12, %c0_21], %40 {strides = array<i32>} : memref<36x256xf32, #tpu.memory_space<vmem>>, vector<4x256xf32>,
    %c0_22 = arith.constant 0 : index
    %c128_23 = arith.constant 128 : index
    %42 = vector.load %arg5[%c0_22, %c128_23] : memref<4x512xf32, #tpu.memory_space<vmem>>, vector<4x256xf32>
    %c16 = arith.constant 16 : index
    %c0_24 = arith.constant 0 : index
    %43 = vector.load %arg6[%c16, %c0_24] : memref<36x256xf32, #tpu.memory_space<vmem>>, vector<4x256xf32>
    tpu.vector_store %arg6[%c16, %c0_24], %42 {strides = array<i32>} : memref<36x256xf32, #tpu.memory_space<vmem>>, vector<4x256xf32>,
    %c0_25 = arith.constant 0 : index
    %c129 = arith.constant 129 : index
    %44 = vector.load %arg5[%c0_25, %c129] : memref<4x512xf32, #tpu.memory_space<vmem>>, vector<4x256xf32>
    %c15_i32_26 = arith.constant 15 : i32
    %45 = vector.broadcast %c15_i32_26 : i32 to vector<4x256xi32>
    %46 = arith.cmpi slt, %16, %45 : vector<4x256xi32>
    %cst_27 = arith.constant 0.000000e+00 : f32
    %47 = vector.broadcast %cst_27 : f32 to vector<4x256xf32>
    %48 = arith.select %46, %44, %47 : vector<4x256xi1>, vector<4x256xf32>
    %c20 = arith.constant 20 : index
    %c0_28 = arith.constant 0 : index
    %49 = vector.load %arg6[%c20, %c0_28] : memref<36x256xf32, #tpu.memory_space<vmem>>, vector<4x256xf32>
    tpu.vector_store %arg6[%c20, %c0_28], %48 {strides = array<i32>} : memref<36x256xf32, #tpu.memory_space<vmem>>, vector<4x256xf32>,
    %c0_29 = arith.constant 0 : index
    %c143 = arith.constant 143 : index
    %50 = vector.load %arg5[%c0_29, %c143] : memref<4x512xf32, #tpu.memory_space<vmem>>, vector<4x256xf32>
    %c1_i32_30 = arith.constant 1 : i32
    %51 = vector.broadcast %c1_i32_30 : i32 to vector<4x256xi32>
    %52 = arith.cmpi sge, %16, %51 : vector<4x256xi32>
    %cst_31 = arith.constant 0.000000e+00 : f32
    %53 = vector.broadcast %cst_31 : f32 to vector<4x256xf32>
    %54 = arith.select %52, %50, %53 : vector<4x256xi1>, vector<4x256xf32>
    %c24 = arith.constant 24 : index
    %c0_32 = arith.constant 0 : index
    %55 = vector.load %arg6[%c24, %c0_32] : memref<36x256xf32, #tpu.memory_space<vmem>>, vector<4x256xf32>
    tpu.vector_store %arg6[%c24, %c0_32], %54 {strides = array<i32>} : memref<36x256xf32, #tpu.memory_space<vmem>>, vector<4x256xf32>,
    %c0_33 = arith.constant 0 : index
    %c144 = arith.constant 144 : index
    %56 = vector.load %arg5[%c0_33, %c144] : memref<4x512xf32, #tpu.memory_space<vmem>>, vector<4x256xf32>
    %c28 = arith.constant 28 : index
    %c0_34 = arith.constant 0 : index
    %57 = vector.load %arg6[%c28, %c0_34] : memref<36x256xf32, #tpu.memory_space<vmem>>, vector<4x256xf32>
    tpu.vector_store %arg6[%c28, %c0_34], %56 {strides = array<i32>} : memref<36x256xf32, #tpu.memory_space<vmem>>, vector<4x256xf32>,
    %c0_35 = arith.constant 0 : index
    %c145 = arith.constant 145 : index
    %58 = vector.load %arg5[%c0_35, %c145] : memref<4x512xf32, #tpu.memory_space<vmem>>, vector<4x256xf32>
    %c15_i32_36 = arith.constant 15 : i32
    %59 = vector.broadcast %c15_i32_36 : i32 to vector<4x256xi32>
    %60 = arith.cmpi slt, %16, %59 : vector<4x256xi32>
    %cst_37 = arith.constant 0.000000e+00 : f32
    %61 = vector.broadcast %cst_37 : f32 to vector<4x256xf32>
    %62 = arith.select %60, %58, %61 : vector<4x256xi1>, vector<4x256xf32>
    %c32 = arith.constant 32 : index
    %c0_38 = arith.constant 0 : index
    %63 = vector.load %arg6[%c32, %c0_38] : memref<36x256xf32, #tpu.memory_space<vmem>>, vector<4x256xf32>
    tpu.vector_store %arg6[%c32, %c0_38], %62 {strides = array<i32>} : memref<36x256xf32, #tpu.memory_space<vmem>>, vector<4x256xf32>,
    %c0_39 = arith.constant 0 : index
    %c0_40 = arith.constant 0 : index
    %64 = vector.load %arg2[%c0_39, %c0_40] : memref<4x36xf32, #tpu.memory_space<vmem>>, vector<4x36xf32>
    %c0_41 = arith.constant 0 : index
    %c0_42 = arith.constant 0 : index
    %65 = vector.load %arg6[%c0_41, %c0_42] : memref<36x256xf32, #tpu.memory_space<vmem>>, vector<36x256xf32>
    %cst_43 = arith.constant dense<0.000000e+00> : vector<4x256xf32>
    %66 = tpu.matmul %64, %65, %cst_43 {dimension_numbers = #tpu.dot_dimension_numbers<[1], [0], [0], [1], [0, 0, 1, 1], [], []>} : vector<4x36xf32>, vector<36x256xf32>, vector<4x256xf32> -> vector<4x256xf32>
    %cst_44 = arith.constant 0.000000e+00 : f32
    %67 = vector.broadcast %cst_44 : f32 to vector<4x256xf32>
    %68 = arith.maximumf %66, %67 : vector<4x256xf32>
    %c0_45 = arith.constant 0 : index
    %c128_46 = arith.constant 128 : index
    %69 = vector.load %arg5[%c0_45, %c128_46] : memref<4x512xf32, #tpu.memory_space<vmem>>, vector<4x256xf32>
    tpu.vector_store %arg5[%c0_45, %c128_46], %68 {strides = array<i32>} : memref<4x512xf32, #tpu.memory_space<vmem>>, vector<4x256xf32>,
    %c0_47 = arith.constant 0 : index
    %c111_48 = arith.constant 111 : index
    %70 = vector.load %arg5[%c0_47, %c111_48] : memref<4x512xf32, #tpu.memory_space<vmem>>, vector<4x256xf32>
    %c1_i32_49 = arith.constant 1 : i32
    %71 = vector.broadcast %c1_i32_49 : i32 to vector<4x256xi32>
    %72 = arith.cmpi sge, %16, %71 : vector<4x256xi32>
    %cst_50 = arith.constant 0.000000e+00 : f32
    %73 = vector.broadcast %cst_50 : f32 to vector<4x256xf32>
    %74 = arith.select %72, %70, %73 : vector<4x256xi1>, vector<4x256xf32>
    %c0_51 = arith.constant 0 : index
    %c0_52 = arith.constant 0 : index
    %75 = vector.load %arg6[%c0_51, %c0_52] : memref<36x256xf32, #tpu.memory_space<vmem>>, vector<4x256xf32>
    tpu.vector_store %arg6[%c0_51, %c0_52], %74 {strides = array<i32>} : memref<36x256xf32, #tpu.memory_space<vmem>>, vector<4x256xf32>,
    %c0_53 = arith.constant 0 : index
    %c112_54 = arith.constant 112 : index
    %76 = vector.load %arg5[%c0_53, %c112_54] : memref<4x512xf32, #tpu.memory_space<vmem>>, vector<4x256xf32>
    %c4_55 = arith.constant 4 : index
    %c0_56 = arith.constant 0 : index
    %77 = vector.load %arg6[%c4_55, %c0_56] : memref<36x256xf32, #tpu.memory_space<vmem>>, vector<4x256xf32>
    tpu.vector_store %arg6[%c4_55, %c0_56], %76 {strides = array<i32>} : memref<36x256xf32, #tpu.memory_space<vmem>>, vector<4x256xf32>,
    %c0_57 = arith.constant 0 : index
    %c113_58 = arith.constant 113 : index
    %78 = vector.load %arg5[%c0_57, %c113_58] : memref<4x512xf32, #tpu.memory_space<vmem>>, vector<4x256xf32>
    %c15_i32_59 = arith.constant 15 : i32
    %79 = vector.broadcast %c15_i32_59 : i32 to vector<4x256xi32>
    %80 = arith.cmpi slt, %16, %79 : vector<4x256xi32>
    %cst_60 = arith.constant 0.000000e+00 : f32
    %81 = vector.broadcast %cst_60 : f32 to vector<4x256xf32>
    %82 = arith.select %80, %78, %81 : vector<4x256xi1>, vector<4x256xf32>
    %c8_61 = arith.constant 8 : index
    %c0_62 = arith.constant 0 : index
    %83 = vector.load %arg6[%c8_61, %c0_62] : memref<36x256xf32, #tpu.memory_space<vmem>>, vector<4x256xf32>
    tpu.vector_store %arg6[%c8_61, %c0_62], %82 {strides = array<i32>} : memref<36x256xf32, #tpu.memory_space<vmem>>, vector<4x256xf32>,
    %c0_63 = arith.constant 0 : index
    %c127_64 = arith.constant 127 : index
    %84 = vector.load %arg5[%c0_63, %c127_64] : memref<4x512xf32, #tpu.memory_space<vmem>>, vector<4x256xf32>
    %c1_i32_65 = arith.constant 1 : i32
    %85 = vector.broadcast %c1_i32_65 : i32 to vector<4x256xi32>
    %86 = arith.cmpi sge, %16, %85 : vector<4x256xi32>
    %cst_66 = arith.constant 0.000000e+00 : f32
    %87 = vector.broadcast %cst_66 : f32 to vector<4x256xf32>
    %88 = arith.select %86, %84, %87 : vector<4x256xi1>, vector<4x256xf32>
    %c12_67 = arith.constant 12 : index
    %c0_68 = arith.constant 0 : index
    %89 = vector.load %arg6[%c12_67, %c0_68] : memref<36x256xf32, #tpu.memory_space<vmem>>, vector<4x256xf32>
    tpu.vector_store %arg6[%c12_67, %c0_68], %88 {strides = array<i32>} : memref<36x256xf32, #tpu.memory_space<vmem>>, vector<4x256xf32>,
    %c0_69 = arith.constant 0 : index
    %c128_70 = arith.constant 128 : index
    %90 = vector.load %arg5[%c0_69, %c128_70] : memref<4x512xf32, #tpu.memory_space<vmem>>, vector<4x256xf32>
    %c16_71 = arith.constant 16 : index
    %c0_72 = arith.constant 0 : index
    %91 = vector.load %arg6[%c16_71, %c0_72] : memref<36x256xf32, #tpu.memory_space<vmem>>, vector<4x256xf32>
    tpu.vector_store %arg6[%c16_71, %c0_72], %90 {strides = array<i32>} : memref<36x256xf32, #tpu.memory_space<vmem>>, vector<4x256xf32>,
    %c0_73 = arith.constant 0 : index
    %c129_74 = arith.constant 129 : index
    %92 = vector.load %arg5[%c0_73, %c129_74] : memref<4x512xf32, #tpu.memory_space<vmem>>, vector<4x256xf32>
    %c15_i32_75 = arith.constant 15 : i32
    %93 = vector.broadcast %c15_i32_75 : i32 to vector<4x256xi32>
    %94 = arith.cmpi slt, %16, %93 : vector<4x256xi32>
    %cst_76 = arith.constant 0.000000e+00 : f32
    %95 = vector.broadcast %cst_76 : f32 to vector<4x256xf32>
    %96 = arith.select %94, %92, %95 : vector<4x256xi1>, vector<4x256xf32>
    %c20_77 = arith.constant 20 : index
    %c0_78 = arith.constant 0 : index
    %97 = vector.load %arg6[%c20_77, %c0_78] : memref<36x256xf32, #tpu.memory_space<vmem>>, vector<4x256xf32>
    tpu.vector_store %arg6[%c20_77, %c0_78], %96 {strides = array<i32>} : memref<36x256xf32, #tpu.memory_space<vmem>>, vector<4x256xf32>,
    %c0_79 = arith.constant 0 : index
    %c143_80 = arith.constant 143 : index
    %98 = vector.load %arg5[%c0_79, %c143_80] : memref<4x512xf32, #tpu.memory_space<vmem>>, vector<4x256xf32>
    %c1_i32_81 = arith.constant 1 : i32
    %99 = vector.broadcast %c1_i32_81 : i32 to vector<4x256xi32>
    %100 = arith.cmpi sge, %16, %99 : vector<4x256xi32>
    %cst_82 = arith.constant 0.000000e+00 : f32
    %101 = vector.broadcast %cst_82 : f32 to vector<4x256xf32>
    %102 = arith.select %100, %98, %101 : vector<4x256xi1>, vector<4x256xf32>
    %c24_83 = arith.constant 24 : index
    %c0_84 = arith.constant 0 : index
    %103 = vector.load %arg6[%c24_83, %c0_84] : memref<36x256xf32, #tpu.memory_space<vmem>>, vector<4x256xf32>
    tpu.vector_store %arg6[%c24_83, %c0_84], %102 {strides = array<i32>} : memref<36x256xf32, #tpu.memory_space<vmem>>, vector<4x256xf32>,
    %c0_85 = arith.constant 0 : index
    %c144_86 = arith.constant 144 : index
    %104 = vector.load %arg5[%c0_85, %c144_86] : memref<4x512xf32, #tpu.memory_space<vmem>>, vector<4x256xf32>
    %c28_87 = arith.constant 28 : index
    %c0_88 = arith.constant 0 : index
    %105 = vector.load %arg6[%c28_87, %c0_88] : memref<36x256xf32, #tpu.memory_space<vmem>>, vector<4x256xf32>
    tpu.vector_store %arg6[%c28_87, %c0_88], %104 {strides = array<i32>} : memref<36x256xf32, #tpu.memory_space<vmem>>, vector<4x256xf32>,
    %c0_89 = arith.constant 0 : index
    %c145_90 = arith.constant 145 : index
    %106 = vector.load %arg5[%c0_89, %c145_90] : memref<4x512xf32, #tpu.memory_space<vmem>>, vector<4x256xf32>
    %c15_i32_91 = arith.constant 15 : i32
    %107 = vector.broadcast %c15_i32_91 : i32 to vector<4x256xi32>
    %108 = arith.cmpi slt, %16, %107 : vector<4x256xi32>
    %cst_92 = arith.constant 0.000000e+00 : f32
    %109 = vector.broadcast %cst_92 : f32 to vector<4x256xf32>
    %110 = arith.select %108, %106, %109 : vector<4x256xi1>, vector<4x256xf32>
    %c32_93 = arith.constant 32 : index
    %c0_94 = arith.constant 0 : index
    %111 = vector.load %arg6[%c32_93, %c0_94] : memref<36x256xf32, #tpu.memory_space<vmem>>, vector<4x256xf32>
    tpu.vector_store %arg6[%c32_93, %c0_94], %110 {strides = array<i32>} : memref<36x256xf32, #tpu.memory_space<vmem>>, vector<4x256xf32>,
    %c0_95 = arith.constant 0 : index
    %c0_96 = arith.constant 0 : index
    %112 = vector.load %arg3[%c0_95, %c0_96] : memref<4x36xf32, #tpu.memory_space<vmem>>, vector<4x36xf32>
    %c0_97 = arith.constant 0 : index
    %c0_98 = arith.constant 0 : index
    %113 = vector.load %arg6[%c0_97, %c0_98] : memref<36x256xf32, #tpu.memory_space<vmem>>, vector<36x256xf32>
    %cst_99 = arith.constant dense<0.000000e+00> : vector<4x256xf32>
    %114 = tpu.matmul %112, %113, %cst_99 {dimension_numbers = #tpu.dot_dimension_numbers<[1], [0], [0], [1], [0, 0, 1, 1], [], []>} : vector<4x36xf32>, vector<36x256xf32>, vector<4x256xf32> -> vector<4x256xf32>
    %115 = arith.addf %114, %20 : vector<4x256xf32>
    %cst_100 = arith.constant 0.000000e+00 : f32
    %116 = vector.broadcast %cst_100 : f32 to vector<4x256xf32>
    %117 = arith.maximumf %115, %116 : vector<4x256xf32>
    %118 = vector.shape_cast %117 : vector<4x256xf32> to vector<1x4x256xf32>
    %c0_101 = arith.constant 0 : index
    %c0_102 = arith.constant 0 : index
    %c0_103 = arith.constant 0 : index
    %119 = vector.load %arg4[%c0_101, %c0_102, %c0_103] : memref<1x4x256xf32, #tpu.memory_space<vmem>>, vector<1x4x256xf32>
    tpu.vector_store %arg4[%c0_101, %c0_102, %c0_103], %118 {strides = array<i32>} : memref<1x4x256xf32, #tpu.memory_space<vmem>>, vector<1x4x256xf32>,
    return
  }
  func.func @transform_0(%arg0: i32) -> (i32, i32, i32) {
    %c0_i32 = arith.constant 0 : i32
    %c0_i32_0 = arith.constant 0 : i32
    %c0_i32_1 = arith.constant 0 : i32
    return %arg0, %c0_i32, %c0_i32_0 : i32, i32, i32
  }
  func.func @transform_1(%arg0: i32) -> (i32, i32) {
    %c0_i32 = arith.constant 0 : i32
    %c0_i32_0 = arith.constant 0 : i32
    %c0_i32_1 = arith.constant 0 : i32
    return %c0_i32, %c0_i32_0 : i32, i32
  }
  func.func @transform_2(%arg0: i32) -> (i32, i32) {
    %c0_i32 = arith.constant 0 : i32
    %c0_i32_0 = arith.constant 0 : i32
    %c0_i32_1 = arith.constant 0 : i32
    return %c0_i32, %c0_i32_0 : i32, i32
  }
  func.func @transform_3(%arg0: i32) -> (i32, i32, i32) {
    %c0_i32 = arith.constant 0 : i32
    %c0_i32_0 = arith.constant 0 : i32
    %c0_i32_1 = arith.constant 0 : i32
    return %arg0, %c0_i32, %c0_i32_0 : i32, i32, i32
  }
}

</mosaic_0001>

<bundles_post_ra>
// kernel: tpu_custom_call.1
= control target key start
LH: loop header
LB: loop body
LE: loop exit
PB: predicated region body
PF: predicated region fallthrough
CT: control target
= control target key end

     0   :  { %8 = vsyncpa [#allocation5], 0  ;;  %s1574_s0 = inlined_call_operand.hbm [shape: f32[2,4,256], index: 0, kind: input, shape index: {}]   ;;  %s1575_s1 = inlined_call_operand.hbm [shape: f32[4,36], index: 1, kind: input, shape index: {}]   ;;  %s1576_s2 = inlined_call_operand.hbm [shape: f32[4,36], index: 2, kind: input, shape index: {}]   ;;  %s1577_s3 = inlined_call_operand.hbm [shape: f32[2,4,256], index: 3, kind: output, shape index: {}]  }
   0x1   :  { %10 = vsyncpa [#allocation5 + $0x1], 0 }
   0x2   :  { %11 = vsyncpa [#allocation8], 0 }
   0x3   :  { %12 = vsyncpa [#allocation6], 0 }
   0x4   :  { %14 = vsyncpa [#allocation6 + $0x1], 0  ;;  %s1230_s12 = smov 0   ;;  %s1232_s13 = smov 0  }
   0x5   :  { %s1234_s14 = smov 0   ;;  %s1236_s15 = smov 0  }
   0x6 LB: > { %s1251_s16 = sadd.s32 4294967295, %s1197_s15   ;;  %s933_s17 = sadd.s32 4294967294, %s1197_s15   ;;  %s1197_s15 = sphi %s1236_s15, %s1595_s15   ;;  %s1193_s14 = sphi %s1234_s14, %s1594_s14   ;;  %s1189_s13 = sphi %s1232_s13, %s1593_s13   ;;  %s1185_s12 = sphi %s1230_s12, %s1592_s12  }
   0x7   : > { %p40_p0 = scmp.ne.s32.totalorder %s1189_s13, %s1185_s12  ;;  %p41_p1 = scmp.eq.s32.totalorder %s1251_s16, 0 }
   0x8   : > { %p106_p2 = scmp.eq.s32.totalorder %s1251_s16, 1  ;;  %p112_p3 = scmp.eq.s32.totalorder %s933_s17, 1 }
   0x9   : > { %p1260_p4 = por %p41_p1, %p40_p0  ;;  %p934_p5 = scmp.ge.s32.totalorder %s1197_s15, 1 }
   0xa   : > { %p1265_p6 = por %p112_p3, %p40_p0  ;;  %p119_p7 = scmp.lt.s32.totalorder %s1197_s15, 3 }
   0xb   : > { %s131_s22 = sshll.u32 %s1575_s1, 4  ;;  %s1199_s24 = smov [#allocation7]   ;;  %s132_s22 = int_to_ptr.hbm [resolvable:$true] %s131_s22 }
   0xc   : > { %p1273_p8 = pnand %p934_p5, %p119_p7  ;;  %s133_s25 = sshll.u32 %s1199_s24, 4  ;;  %s134_s25 = int_to_ptr.vmem [resolvable:$true] %s133_s25 }
   0xd   : > { %s143_s28 = sshll.u32 %s1576_s2, 4  ;;  %s1200_s29 = smov [#allocation9]   ;;  %s144_s28 = int_to_ptr.hbm [resolvable:$true] %s143_s28 }
   0xe   : > { %p973_p10 = pneg %p1273_p8  ;;  %s145_s30 = sshll.u32 %s1200_s29, 4  ;;  %s146_s30 = int_to_ptr.vmem [resolvable:$true] %s145_s30 }
   0xf   : > { %s1286_s4 = sadd.s32 1, %s1197_s15   ;;  %s27_s5 = sadd.s32 1, %s1193_s14 }
  0x10   : > { %p974_p11 = pnand %p973_p10, %p41_p1  ;;  %s24_s6 = ssub.s32 %s1197_s15, %s1286_s4 }
  0x11   : > { %p34_p12 = scmp.ne.s32.totalorder %s1193_s14, %s1189_s13  ;;  %p25_p13 = scmp.eq.s32.totalorder %s24_s6, 0 }
  0x12   : > { %976 = dma.hbm_to_vmem [thread:$0]  (!%p974_p11), %s132_s22, 64, %s134_s25, [#allocation8]  }
  0x13   : > { %979 = dma.hbm_to_vmem [thread:$0]  (!%p974_p11), %s144_s28, 64, %s146_s30, [#allocation8]  }
  0x14   : > { %p35_p0 = scmp.eq.s32.totalorder %s1197_s15, 0  ;;  %p1296_p3 = por %p106_p2, %p34_p12 }
  0x15   : > { %p990_p5 = scmp.lt.s32.totalorder %s1197_s15, 2  ;;  %s156_s9 = sand.u32 1, %s1193_s14  }
  0x16   : > { %s1302_s8 = scalar_select %p25_p13, %s1193_s14, %s27_s5  }
  0x17   : > { %p36_p7 = por %p35_p0, %p34_p12  ;;  %s938_s10 = sshll.u32 %s156_s9, 3 }
  0x18   : > { %s959_s11 = sshll.u32 %s1197_s15, 3  ;;  %s160_s22 = scalar_lea.vmem [#allocation4], %s938_s10 }
  0x19   : > { %s165_s21 = scalar_lea.hbm %s1574_s0, %s959_s11  ;;  %s169_s24 = sshll.u32 %s160_s22, 4  ;;  %s170_s24 = int_to_ptr.vmem [resolvable:$true] %s169_s24 }
  0x1a   : > { %s167_s25 = sshll.u32 %s165_s21, 4  ;;  %p1309_p2 = pnand %p990_p5, %p36_p7  ;;  %s168_s25 = int_to_ptr.hbm [resolvable:$true] %s167_s25 }
  0x1b   : > { %s157_s27 = scalar_lea.sflag [#allocation5], %s156_s9  ;;  %s1097_s28 = sshra.s32 %s168_s25, 4  ;;  %s1098_s28 = int_to_ptr.hbm [resolvable:$true] %s1097_s28 }
  0x1c   : > { %s1099_s29 = scalar_lea.hbm %s1098_s28, 8  ;;  %p1101_p11 = pneg %p1309_p2 }
  0x1d   : > { %p1100_p10 = scmp.ne.s32.totalorder %s1098_s28, %s1099_s29  ;;  %s1104_s6 = scalar_lea.hbm %s1574_s0, 16 }
  0x1e   : > { %p1105_p0 = scmp.lt.s32.totalorder %s1098_s28, %s1574_s0  ;;  %p1106_p5 = scmp.lt.s32.totalorder %s1104_s6, %s1099_s29 }
  0x1f   : > { %p1102_p12 = pnand %p1101_p11, %p1100_p10 }
  0x20   : > { %p1107_p7 = por %p1106_p5, %p1105_p0 }
  0x21   : > { %p1103_p13 = pneg %p1102_p12 }
  0x23   : > { %p1108_p9 = pnand %p1107_p7, %p1103_p13 }
  0x25   : > { %1111 = shalt.err (!%p1108_p9)
}
  0x26   : > { %983 = dma.hbm_to_vmem [thread:$0]  (!%p1309_p2), %s168_s25, 128, %s170_s24, %s157_s27  }
  0x27   : > { %178 = sbr.rel (%p1273_p8) target bundleno = 769 (0x301), region = 32  ;;  %s1326_s9 = sand.u32 (!%p1273_p8), 1, %s1189_s13  }
  0x28   : > { %s942_s17 = sshll.u32 (!%p1273_p8), %s1326_s9, 3  ;;  %s181_s20 = scalar_lea.sflag (!%p1273_p8), [#allocation5], %s1326_s9 }
  0x29   : > { %s184_s21 = scalar_lea.vmem (!%p1273_p8), [#allocation4], %s942_s17 }
  0x2c   : > { %1172 = dma.done.wait (%p1260_p4), %s181_s20, 128  }
  0x2d   : > { %1174 = vsyncadd (%p1260_p4), %s181_s20, 4294967168 }
  0x2e   : > { %1176 = dma.done.wait (%p41_p1), [#allocation8], 128  }
  0x2f   : > { %1178 = vsyncadd (%p41_p1), [#allocation8], 4294967168  ;;  %v1201_v0 = vmov 0.0   ;;  %v1340_v1 = vld [vmem:[%s184_s21] sm:$0xff]  ;;  %s1202_s18 = smov 17   ;;  %s1203_s23 = smov 16   ;;  %v218_v37 = vlaneseq }
  0x30   : > { %245 = vst [vmem:[#allocation2] sm:$0xff] %v1201_v0  ;;  %s1204_s22 = smov 15   ;;  %s1205_s24 = smov 1   ;;  %vm267_vm0 = vcmask 138240   ;;  %vm318_vm2 = vcmask 121856   ;;  %vm343_vm5 = vcmask 7168  }
  0x31   : > { %246 = vst [vmem:[#allocation2 + $0x8] sm:$0xff] %v1201_v0  ;;  %s1206_s25 = smov 113   ;;  %s1207_s26 = smov 127   ;;  %v219_v38 = vand.u32 127, %v218_v37  ;;  %vm414_vm7 = vcmask 924672   ;;  %vm383_vm8 = vcmask 1039360  }
  0x32   : > { %248 = vst [vmem:[#allocation2 + $0x4] sm:$0xff] %v1340_v1  ;;  %s1208_s27 = smov 111   ;;  %s1209_s28 = smov 112   ;;  %vm293_vm9 = vcmask 130048   ;;  %vm440_vm10 = vcmask 916480   ;;  %vm463_vm11 = vcmask 908288  }
  0x33   : > { %v220_v40 = vadd.s32 128, %v219_v38  ;;  %v225_v48 = vand.u32 15, %v219_v38  ;;  %vm487_vm12 = vcmask 1043456   ;;  %vm483_vm13 = vcmask 293888   ;;  %s960_s29 = sshll.u32 %s1251_s16, 3  ;;  %s217_s10 = scalar_lea.vmem [#allocation10], %s942_s17 }
  0x34   : > { %s839_s6 = scalar_lea.hbm %s1577_s3, %s960_s29  ;;  %s841_s11 = sshll.u32 %s217_s10, 4  ;;  %s842_s11 = int_to_ptr.vmem [resolvable:$true] %s841_s11 }
  0x35   : > { %v232_v41 = vand.u32 15, %v220_v40  ;;  %vm1393_vm3 = vcmp.lt.s32.totalorder %v225_v48, 15  ;;  %vm1410_vm6 = vcmp.ge.s32.totalorder %v225_v48, 1  ;;  %s843_s20 = sshll.u32 %s839_s6, 4  ;;  %s828_s16 = scalar_lea.sflag [#allocation6], %s1326_s9  ;;  %s844_s20 = int_to_ptr.hbm [resolvable:$true] %s843_s20 }
  0x36   : > { %s1141_s21 = sshra.s32 %s844_s20, 4  ;;  %s1147_s17 = scalar_lea.hbm %s1577_s3, 16  ;;  %s1142_s21 = int_to_ptr.hbm [resolvable:$true] %s1141_s21 }
  0x37   : > { %vm1385_vm1 = vcmp.ge.s32.totalorder %v232_v41, 1  ;;  %vm1397_vm4 = vcmp.lt.s32.totalorder %v232_v41, 15  ;;  %p1148_p9 = scmp.lt.s32.totalorder %s1142_s21, %s1577_s3 }
  0x38   : > { %v368_v16 = vld [vmem:[#allocation2 + $0xc] sm:$0xf] }
  0x39   : > { %v250_v2 = vld [vmem:[#allocation2 + $0x8] sm:$0xf]  ;;  %v249_v3 = vld [vmem:[#allocation2] sm:$0xff]  ;;  %v399_v20 = vld [vmem:[#allocation2 + $0xc] sm:$0xf] }
  0x3a   : > { %257 = vst [vmem:[#allocation1 + $0x10] ss:$2 sm:$0xff] %v250_v2  ;;  %v277_v5 = vld [vmem:[#allocation2 + $0x8] sm:$0xf]  ;;  %v424_v24 = vld [vmem:[#allocation2 + $0xc] sm:$0xf] }
  0x3b   : > { %255 = vst [vmem:[#allocation1] ss:$2 sm:$0xff] %v249_v3  ;;  %v301_v8 = vld [vmem:[#allocation2 + $0x8] sm:$0xf]  ;;  %v448_v28 = vld [vmem:[#allocation2 + $0xc] sm:$0xf] }
  0x3c   : > { %v328_v12 = vld [vmem:[#allocation2 + $0x8] sm:$0xf] }
  0x41   : > { %v260_v4 = vld.sshfl [vmem:[#allocation1 + $0x10] sm:$0xff pattern:$0x75316420] }
  0x42   : > { %265 = vrot.lane.b32.xlu0 %v260_v4, %s1202_s18  ;;  %v259_v6 = vld.sshfl [vmem:[#allocation1 + $0x8] sm:$0xff pattern:$0x75316420]  ;;  %v1344_v7 = vld.sshfl [vmem:[#allocation1] sm:$0xff pattern:$0x75316420] }
  0x43   : > { %263 = vrot.lane.b32.xlu2 %v259_v6, %s1202_s18  ;;  %281 = vst [vmem:[#allocation1 + $0x1] ss:$2 sm:$0xff] %v249_v3 }
  0x44   : > { %283 = vst [vmem:[#allocation1 + $0x11] ss:$2 sm:$0xff] %v277_v5 }
  0x4a   : > { %v1347_v9 = vld.sshfl [vmem:[#allocation1] sm:$0xff pattern:$0x75316420]  ;;  %v285_v10 = vld.sshfl [vmem:[#allocation1 + $0x8] sm:$0xff pattern:$0x75316420] }
  0x4b   : > { %306 = vst [vmem:[#allocation1] ss:$2 sm:$0xff] %v249_v3  ;;  %v1349_v11 = vld.sshfl [vmem:[#allocation1 + $0x10] sm:$0xff pattern:$0x75316420]  ;;  %289 = vrot.lane.b32.xlu2 %v285_v10, %s1203_s23 }
  0x4c   : > { %308 = vst [vmem:[#allocation1 + $0x10] ss:$2 sm:$0xff] %v301_v8 }
  0x52   : > { %v309_v13 = vld.sshfl [vmem:[#allocation1] sm:$0xff pattern:$0x75316420]  ;;  %v310_v14 = vld.sshfl [vmem:[#allocation1 + $0x8] sm:$0xff pattern:$0x75316420] }
  0x53   : > { %312 = vrot.lane.b32.xlu1 %v309_v13, %s1204_s22  ;;  %v311_v15 = vld.sshfl [vmem:[#allocation1 + $0x10] sm:$0xff pattern:$0x75316420]  ;;  %331 = vst [vmem:[#allocation1] ss:$2 sm:$0xff] %v249_v3  ;;  %314 = vrot.lane.b32.xlu2 %v310_v14, %s1204_s22 }
  0x54   : > { %316 = vrot.lane.b32.xlu0 %v311_v15, %s1204_s22  ;;  %333 = vst [vmem:[#allocation1 + $0x10] ss:$2 sm:$0xff] %v328_v12 }
  0x5a   : > { %v335_v17 = vld.sshfl [vmem:[#allocation1 + $0x8] sm:$0xff pattern:$0x75316420]  ;;  %v334_v18 = vld.sshfl [vmem:[#allocation1] sm:$0xff pattern:$0x75316420] }
  0x5b   : > { %v336_v19 = vld.sshfl [vmem:[#allocation1 + $0x10] sm:$0xff pattern:$0x75316420]  ;;  %360 = vst [vmem:[#allocation1] ss:$2 sm:$0xff] %v1340_v1 }
  0x5c   : > { %341 = vrot.lane.b32.xlu1 %v336_v19, %s1205_s24  ;;  %339 = vrot.lane.b32.xlu0 %v335_v17, %s1205_s24  ;;  %373 = vst [vmem:[#allocation1 + $0x10] ss:$2 sm:$0xff] %v368_v16 }
  0x62   : > { %v361_v21 = vld.sshfl [vmem:[#allocation1] sm:$0xff pattern:$0x75316420]  ;;  %v362_v22 = vld.sshfl [vmem:[#allocation1 + $0x8] sm:$0xff pattern:$0x75316420] }
  0x63   : > { %v376_v23 = vld.sshfl [vmem:[#allocation1 + $0x10] sm:$0xff pattern:$0x75316420]  ;;  %371 = vst [vmem:[#allocation1] ss:$2 sm:$0xff] %v1340_v1 }
  0x64   : > { %337 = vrot.lane.b32.xlu1 %v334_v18, %s1205_s24  ;;  %404 = vst [vmem:[#allocation1 + $0x10] ss:$2 sm:$0xff] %v399_v20 }
  0x65   : > { %365 = vst [vmem:[#allocation3 + $0x48] sm:$0xf] %v361_v21 }
  0x66   : > { %366 = vst [vmem:[#allocation3 + $0x28] sm:$0xf] %v362_v22 }
  0x6a   : > { %v375_v25 = vld.sshfl [vmem:[#allocation1 + $0x8] sm:$0xff pattern:$0x75316420]  ;;  %v374_v26 = vld.sshfl [vmem:[#allocation1] sm:$0xff pattern:$0x75316420] }
  0x6b   : > { %v407_v27 = vld.sshfl [vmem:[#allocation1 + $0x10] sm:$0xff pattern:$0x75316420]  ;;  %402 = vst [vmem:[#allocation1] ss:$2 sm:$0xff] %v1340_v1 }
  0x6c   : > { %412 = vrot.lane.b32.xlu2 %v407_v27, %s1206_s25  ;;  %381 = vrot.lane.b32.xlu1 %v376_v23, %s1207_s26  ;;  %430 = vst [vmem:[#allocation1 + $0x11] ss:$2 sm:$0xff] %v424_v24 }
  0x72   : > { %v405_v29 = vld.sshfl [vmem:[#allocation1] sm:$0xff pattern:$0x75316420]  ;;  %v406_v30 = vld.sshfl [vmem:[#allocation1 + $0x8] sm:$0xff pattern:$0x75316420] }
  0x73   : > { %408 = vrot.lane.b32.xlu0 %v405_v29, %s1206_s25  ;;  %v433_v31 = vld.sshfl [vmem:[#allocation1 + $0x10] sm:$0xff pattern:$0x75316420]  ;;  %428 = vst [vmem:[#allocation1 + $0x1] ss:$2 sm:$0xff] %v1340_v1 }
  0x74   : > { %379 = vrot.lane.b32.xlu1 %v375_v25, %s1207_s26  ;;  %377 = vrot.lane.b32.xlu2 %v374_v26, %s1207_s26  ;;  %453 = vst [vmem:[#allocation1 + $0x10] ss:$2 sm:$0xff] %v448_v28 }
  0x7a   : > { %v432_v32 = vld.sshfl [vmem:[#allocation1 + $0x8] sm:$0xff pattern:$0x75316420]  ;;  %v431_v33 = vld.sshfl [vmem:[#allocation1] sm:$0xff pattern:$0x75316420] }
  0x7b   : > { %v456_v34 = vld.sshfl [vmem:[#allocation1 + $0x10] sm:$0xff pattern:$0x75316420]  ;;  %451 = vst [vmem:[#allocation1] ss:$2 sm:$0xff] %v1340_v1 }
  0x7c   : > { %410 = vrot.lane.b32.xlu2 %v406_v30, %s1206_s25  ;;  %461 = vrot.lane.b32.xlu0 %v456_v34, %s1208_s27 }
  0x7d   : > { %436 = vrot.lane.b32.xlu1 %v432_v32, %s1209_s28 }
  0x82   : > { %v455_v35 = vld.sshfl [vmem:[#allocation1 + $0x8] sm:$0xff pattern:$0x75316420]  ;;  %v454_v36 = vld.sshfl [vmem:[#allocation1] sm:$0xff pattern:$0x75316420] }
  0x84   : > { %438 = vrot.lane.b32.xlu2 %v433_v31, %s1209_s28  ;;  %459 = vrot.lane.b32.xlu0 %v455_v35, %s1208_s27 }
  0x85   : > { %434 = vrot.lane.b32.xlu1 %v431_v33, %s1209_s28 }
  0x8c   : > { %287 = vrot.lane.b32.xlu2 %v1347_v9, %s1203_s23  ;;  %457 = vrot.lane.b32.xlu0 %v454_v36, %s1208_s27 }
  0x8d   : > { %261 = vrot.lane.b32.xlu1 %v1344_v7, %s1202_s18 }
  0x94   : > { %291 = vrot.lane.b32.xlu0 %v1349_v11, %s1203_s23 }
  0x9d   : > { %v1381_v39 = vpop.permute.xlu2 %263 }
  0xa5   : > { %v1383_v42 = vpop.permute.xlu2 %289 }
  0xad   : > { %v315_v47 = vpop.permute.xlu2 %314 }
  0xb4   : > { %v266_v44 = vpop.permute.xlu0 %265 }
  0xb5   : > { %v269_v45 = vsel %vm267_vm0, %v1381_v39, %v266_v44 }
  0xb6   : > { %v273_v46 = vsel %vm1385_vm1, %v269_v45, 0.0 }
  0xb7   : > { %275 = vst [vmem:[#allocation3] sm:$0xf] %v273_v46 }
  0xc5   : > { %v313_v50 = vpop.permute.xlu1 %312 }
  0xc6   : > { %v413_v52 = vpop.permute.xlu2 %412  ;;  %v319_v53 = vsel %vm318_vm2, %v313_v50, %v315_v47  ;;  %v317_v54 = vpop.permute.xlu0 %316  ;;  %v472_v50 = vld [vmem:[#allocation7] sm:$0xf] }
  0xc7   : > { %v323_v55 = vsel %vm1393_vm3, %v319_v53, 0.0  ;;  %v320_v56 = vsel %vm318_vm2, %v315_v47, %v317_v54 }
  0xc8   : > { %325 = vst [vmem:[#allocation3 + $0x18] sm:$0xf] %v323_v55  ;;  %v324_v57 = vsel %vm1397_vm4, %v320_v56, 0.0 }
  0xc9   : > { %326 = vst [vmem:[#allocation3 + $0x10] sm:$0xf] %v324_v57 }
  0xce   : > { %v342_v58 = vpop.permute.xlu1 %341  ;;  %v378_v59 = vpop.permute.xlu2 %377 }
  0xcf   : > { %v340_v60 = vpop.permute.xlu0 %339 }
  0xd0   : > { %v345_v61 = vsel %vm343_vm5, %v340_v60, %v342_v58 }
  0xd1   : > { %v349_v62 = vsel %vm1385_vm1, %v345_v61, 0.0 }
  0xd2   : > { %v353_v63 = vrot.slane %v349_v62, 4 }
  0xd4   : > { %357 = vst [vmem:[#allocation3 + $0x10] sm:$0xf0] %v353_v63 }
  0xd6   : > { %v338_v2 = vpop.permute.xlu1 %337  ;;  %v411_v3 = vpop.permute.xlu2 %410 }
  0xd7   : > { %v344_v4 = vsel %vm343_vm5, %v338_v2, %v340_v60  ;;  %v416_v5 = vsel %vm414_vm7, %v411_v3, %v413_v52 }
  0xd8   : > { %v348_v6 = vsel %vm1410_vm6, %v344_v4, 0.0  ;;  %v420_v7 = vsel %vm1385_vm1, %v416_v5, 0.0 }
  0xd9   : > { %v352_v8 = vrot.slane %v348_v6, 4  ;;  %422 = vst [vmem:[#allocation3 + $0x20] sm:$0xf] %v420_v7 }
  0xdb   : > { %356 = vst [vmem:[#allocation3 + $0x18] sm:$0xf0] %v352_v8 }
  0xde   : > { %v382_v9 = vpop.permute.xlu1 %381  ;;  %v439_v10 = vpop.permute.xlu2 %438 }
  0xe2   : > { %v475_v48 = vld [vmem:[#allocation3 + $0x18] sm:$0xff] }
  0xe5   : > { %v409_v11 = vpop.permute.xlu0 %408 }
  0xe6   : > { %v380_v12 = vpop.permute.xlu1 %379  ;;  %v288_v13 = vpop.permute.xlu2 %287  ;;  %v415_v14 = vsel %vm414_vm7, %v409_v11, %v411_v3  ;;  %v653_v11 = vld [vmem:[#allocation2 + $0xc] sm:$0xf] }
  0xe7   : > { %v384_v15 = vsel %vm383_vm8, %v378_v59, %v380_v12  ;;  %v385_v16 = vsel %vm383_vm8, %v380_v12, %v382_v9  ;;  %v294_v17 = vsel %vm293_vm9, %v288_v13, %v1383_v42  ;;  %v419_v18 = vsel %vm1410_vm6, %v415_v14, 0.0 }
  0xe8   : > { %v388_v19 = vsel %vm1393_vm3, %v384_v15, 0.0  ;;  %v389_v20 = vsel %vm1397_vm4, %v385_v16, 0.0  ;;  %298 = vst [vmem:[#allocation3 + $0x30] sm:$0xf0] %v294_v17  ;;  %v683_v15 = vld [vmem:[#allocation2 + $0xc] sm:$0xf] }
  0xe9   : > { %v392_v21 = vrot.slane %v388_v19, 4  ;;  %v393_v22 = vrot.slane %v389_v20, 4  ;;  %421 = vst [vmem:[#allocation3 + $0x8] sm:$0xf] %v419_v18 }
  0xeb   : > { %396 = vst [vmem:[#allocation3 + $0x48] sm:$0xf0] %v392_v21  ;;  %v707_v21 = vld [vmem:[#allocation2 + $0xc] sm:$0xf] }
  0xec   : > { %397 = vst [vmem:[#allocation3 + $0x28] sm:$0xf0] %v393_v22 }
  0xee   : > { %v462_v23 = vpop.permute.xlu0 %461 }
  0xef   : > { %v437_v24 = vpop.permute.xlu1 %436 }
  0xf0   : > { %v442_v25 = vsel %vm440_vm10, %v437_v24, %v439_v10 }
  0xf1   : > { %446 = vst [vmem:[#allocation3 + $0x20] sm:$0xf0] %v442_v25  ;;  %v730_v25 = vld [vmem:[#allocation2 + $0xc] sm:$0xf] }
  0xf2   : > { %v477_v47 = vld [vmem:[#allocation3 + $0x48] sm:$0xff] }
  0xf3   : > { %v478_v40 = vld [vmem:[#allocation3 + $0x28] sm:$0xff] }
  0xf6   : > { %v460_v26 = vpop.permute.xlu0 %459 }
  0xf7   : > { %v435_v27 = vpop.permute.xlu1 %434  ;;  %v465_v28 = vsel %vm463_vm11, %v460_v26, %v462_v23 }
  0xf8   : > { %v441_v29 = vsel %vm440_vm10, %v435_v27, %v437_v24  ;;  %v469_v30 = vsel %vm1397_vm4, %v465_v28, 0.0  ;;  %v480_v38 = vld [vmem:[#allocation3 + $0x20] sm:$0xff] }
  0xf9   : > { %445 = vst [vmem:[#allocation3 + $0x8] sm:$0xf0] %v441_v29 }
  0xfa   : > { %471 = vst [vmem:[#allocation3 + $0x38] sm:$0xf] %v469_v30 }
  0xfe   : > { %v458_v31 = vpop.permute.xlu0 %457 }
  0xff   : > { %v262_v32 = vpop.permute.xlu1 %261  ;;  %v464_v33 = vsel %vm463_vm11, %v458_v31, %v460_v26 }
 0x100   : > { %v268_v34 = vsel %vm267_vm0, %v262_v32, %v1381_v39  ;;  %v468_v35 = vsel %vm1393_vm3, %v464_v33, 0.0  ;;  %v476_v39 = vld [vmem:[#allocation3 + $0x10] sm:$0xff]  ;;  %v479_v46 = vld [vmem:[#allocation3 + $0x8] sm:$0xff] }
 0x101   : > { %v272_v36 = vsel %vm1410_vm6, %v268_v34, 0.0  ;;  %470 = vst [vmem:[#allocation3 + $0x40] sm:$0xf] %v468_v35  ;;  %v482_v37 = vld [vmem:[#allocation3 + $0x38] sm:$0xf] }
 0x102   : > { %274 = vst [vmem:[#allocation3 + $0x30] sm:$0xf] %v272_v36  ;;  %948 = vmatpush.msk.msra.mxu1 %vm487_vm12, %v482_v37 }
 0x104   : > { %526 = vmatpush.msra.mxu1 %v480_v38 }
 0x106   : > { %527 = vmatpush.msra.mxu1 %v478_v40  ;;  %v292_v41 = vpop.permute.xlu0 %291 }
 0x107   : > { %v295_v44 = vsel %vm293_vm9, %v1383_v42, %v292_v41 }
 0x108   : > { %299 = vst [vmem:[#allocation3] sm:$0xf0] %v295_v44  ;;  %528 = vmatpush.msra.mxu1 %v476_v39  ;;  %v481_v45 = vld [vmem:[#allocation3 + $0x40] sm:$0xf] }
 0x109   : > { %946 = vmatpush.msk.msra.mxu0 %vm487_vm12, %v481_v45  ;;  %v473_v53 = vld [vmem:[#allocation3 + $0x30] sm:$0xff] }
 0x10b   : > { %506 = vmatpush.msra.mxu0 %v479_v46 }
 0x10d   : > { %507 = vmatpush.msra.mxu0 %v477_v47 }
 0x10f   : > { %508 = vmatpush.msra.mxu0 %v475_v48  ;;  %v474_v52 = vld [vmem:[#allocation3] sm:$0xff] }
 0x110   : > { %529 = vmatpush.msra.mxu1 %v474_v52 }
 0x111   : > { %509 = vmatpush.msra.mxu0 %v473_v53  ;;  %949 = vmatmul.msk.f32.vlgmr.msra.gmra.mxu1 %vm483_vm13, %v472_v50 }
 0x112   : > { %947 = vmatmul.msk.f32.vlgmr.msra.gmra.mxu0 %vm483_vm13, %v472_v50 }
 0x18e   : > { %v531_v42 = vpop.f32.mrf.mxu1 }
 0x18f   : > { %v535_v54 = vmax.f32 %v531_v42, 0.0  ;;  %v511_v55 = vpop.f32.mrf.mxu0 }
 0x190   : > { %v534_v56 = vmax.f32 %v511_v55, 0.0 }
 0x191   : > { %v538_v57 = vrot.slane %v535_v54, 4 }
 0x193   : > { %v1450_v58 = vsel %vm487_vm12, %v534_v56, %v538_v57 }
 0x194   : > { %541 = vst [vmem:[#allocation2 + $0x4] sm:$0xff] %v1450_v58 }
 0x19b   : > { %v542_v59 = vld [vmem:[#allocation2] sm:$0xff]  ;;  %v543_v60 = vld [vmem:[#allocation2 + $0x8] sm:$0xf] }
 0x19c   : > { %546 = vst [vmem:[#allocation1] ss:$2 sm:$0xff] %v542_v59  ;;  %v567_v61 = vld [vmem:[#allocation2 + $0x8] sm:$0xf] }
 0x19d   : > { %548 = vst [vmem:[#allocation1 + $0x10] ss:$2 sm:$0xff] %v543_v60  ;;  %v590_v3 = vld [vmem:[#allocation2 + $0x8] sm:$0xf] }
 0x19e   : > { %v614_v7 = vld [vmem:[#allocation2 + $0x8] sm:$0xf] }
 0x1a3   : > { %v1453_v62 = vld.sshfl [vmem:[#allocation1] sm:$0xff pattern:$0x75316420]  ;;  %v550_v63 = vld.sshfl [vmem:[#allocation1 + $0x8] sm:$0xff pattern:$0x75316420] }
 0x1a4   : > { %571 = vst [vmem:[#allocation1 + $0x1] ss:$2 sm:$0xff] %v542_v59  ;;  %v551_v2 = vld.sshfl [vmem:[#allocation1 + $0x10] sm:$0xff pattern:$0x75316420]  ;;  %554 = vrot.lane.b32.xlu2 %v550_v63, %s1202_s18 }
 0x1a5   : > { %556 = vrot.lane.b32.xlu0 %v551_v2, %s1202_s18  ;;  %573 = vst [vmem:[#allocation1 + $0x11] ss:$2 sm:$0xff] %v567_v61 }
 0x1ab   : > { %v574_v4 = vld.sshfl [vmem:[#allocation1] sm:$0xff pattern:$0x75316420]  ;;  %v575_v5 = vld.sshfl [vmem:[#allocation1 + $0x8] sm:$0xff pattern:$0x75316420] }
 0x1ac   : > { %593 = vst [vmem:[#allocation1] ss:$2 sm:$0xff] %v542_v59  ;;  %579 = vrot.lane.b32.xlu2 %v575_v5, %s1203_s23  ;;  %v576_v6 = vld.sshfl [vmem:[#allocation1 + $0x10] sm:$0xff pattern:$0x75316420] }
 0x1ad   : > { %595 = vst [vmem:[#allocation1 + $0x10] ss:$2 sm:$0xff] %v590_v3 }
 0x1b3   : > { %v596_v8 = vld.sshfl [vmem:[#allocation1] sm:$0xff pattern:$0x75316420]  ;;  %v597_v9 = vld.sshfl [vmem:[#allocation1 + $0x8] sm:$0xff pattern:$0x75316420] }
 0x1b4   : > { %617 = vst [vmem:[#allocation1] ss:$2 sm:$0xff] %v542_v59  ;;  %v598_v10 = vld.sshfl [vmem:[#allocation1 + $0x10] sm:$0xff pattern:$0x75316420]  ;;  %601 = vrot.lane.b32.xlu2 %v597_v9, %s1204_s22  ;;  %599 = vrot.lane.b32.xlu1 %v596_v8, %s1204_s22 }
 0x1b5   : > { %603 = vrot.lane.b32.xlu0 %v598_v10, %s1204_s22  ;;  %619 = vst [vmem:[#allocation1 + $0x10] ss:$2 sm:$0xff] %v614_v7 }
 0x1bb   : > { %v620_v12 = vld.sshfl [vmem:[#allocation1] sm:$0xff pattern:$0x75316420]  ;;  %v621_v13 = vld.sshfl [vmem:[#allocation1 + $0x8] sm:$0xff pattern:$0x75316420] }
 0x1bc   : > { %645 = vst [vmem:[#allocation1] ss:$2 sm:$0xff] %v1450_v58  ;;  %v622_v14 = vld.sshfl [vmem:[#allocation1 + $0x10] sm:$0xff pattern:$0x75316420] }
 0x1bd   : > { %627 = vrot.lane.b32.xlu1 %v622_v14, %s1205_s24  ;;  %625 = vrot.lane.b32.xlu0 %v621_v13, %s1205_s24  ;;  %658 = vst [vmem:[#allocation1 + $0x10] ss:$2 sm:$0xff] %v653_v11 }
 0x1c3   : > { %v646_v16 = vld.sshfl [vmem:[#allocation1] sm:$0xff pattern:$0x75316420]  ;;  %v647_v17 = vld.sshfl [vmem:[#allocation1 + $0x8] sm:$0xff pattern:$0x75316420] }
 0x1c4   : > { %656 = vst [vmem:[#allocation1] ss:$2 sm:$0xff] %v1450_v58  ;;  %v661_v18 = vld.sshfl [vmem:[#allocation1 + $0x10] sm:$0xff pattern:$0x75316420] }
 0x1c5   : > { %650 = vst [vmem:[#allocation3 + $0x48] sm:$0xf] %v646_v16  ;;  %666 = vrot.lane.b32.xlu0 %v661_v18, %s1207_s26  ;;  %623 = vrot.lane.b32.xlu1 %v620_v12, %s1205_s24 }
 0x1c6   : > { %651 = vst [vmem:[#allocation3 + $0x28] sm:$0xf] %v647_v17 }
 0x1c7   : > { %688 = vst [vmem:[#allocation1 + $0x10] ss:$2 sm:$0xff] %v683_v15 }
 0x1cb   : > { %v659_v19 = vld.sshfl [vmem:[#allocation1] sm:$0xff pattern:$0x75316420]  ;;  %v660_v20 = vld.sshfl [vmem:[#allocation1 + $0x8] sm:$0xff pattern:$0x75316420] }
 0x1cc   : > { %664 = vrot.lane.b32.xlu2 %v660_v20, %s1207_s26  ;;  %686 = vst [vmem:[#allocation1] ss:$2 sm:$0xff] %v1450_v58 }
 0x1ce   : > { %v691_v22 = vld.sshfl [vmem:[#allocation1 + $0x10] sm:$0xff pattern:$0x75316420] }
 0x1cf   : > { %713 = vst [vmem:[#allocation1 + $0x11] ss:$2 sm:$0xff] %v707_v21 }
 0x1d3   : > { %v690_v23 = vld.sshfl [vmem:[#allocation1 + $0x8] sm:$0xff pattern:$0x75316420]  ;;  %v689_v24 = vld.sshfl [vmem:[#allocation1] sm:$0xff pattern:$0x75316420] }
 0x1d4   : > { %696 = vrot.lane.b32.xlu2 %v691_v22, %s1206_s25  ;;  %694 = vrot.lane.b32.xlu1 %v690_v23, %s1206_s25  ;;  %711 = vst [vmem:[#allocation1 + $0x1] ss:$2 sm:$0xff] %v1450_v58 }
 0x1d5   : > { %692 = vrot.lane.b32.xlu0 %v689_v24, %s1206_s25 }
 0x1d6   : > { %v716_v26 = vld.sshfl [vmem:[#allocation1 + $0x10] sm:$0xff pattern:$0x75316420] }
 0x1d7   : > { %735 = vst [vmem:[#allocation1 + $0x10] ss:$2 sm:$0xff] %v730_v25 }
 0x1db   : > { %v715_v27 = vld.sshfl [vmem:[#allocation1 + $0x8] sm:$0xff pattern:$0x75316420]  ;;  %v714_v28 = vld.sshfl [vmem:[#allocation1] sm:$0xff pattern:$0x75316420] }
 0x1dc   : > { %662 = vrot.lane.b32.xlu2 %v659_v19, %s1207_s26  ;;  %733 = vst [vmem:[#allocation1] ss:$2 sm:$0xff] %v1450_v58 }
 0x1de   : > { %v738_v29 = vld.sshfl [vmem:[#allocation1 + $0x10] sm:$0xff pattern:$0x75316420] }
 0x1df   : > { %743 = vrot.lane.b32.xlu1 %v738_v29, %s1208_s27 }
 0x1e3   : > { %v737_v30 = vld.sshfl [vmem:[#allocation1 + $0x8] sm:$0xff pattern:$0x75316420]  ;;  %v736_v31 = vld.sshfl [vmem:[#allocation1] sm:$0xff pattern:$0x75316420] }
 0x1e4   : > { %721 = vrot.lane.b32.xlu2 %v716_v26, %s1209_s28  ;;  %741 = vrot.lane.b32.xlu0 %v737_v30, %s1208_s27  ;;  %765 = vst [vmem:[#allocation1] ss:$2 sm:$0xff] %v1340_v1 }
 0x1e7   : > { %719 = vrot.lane.b32.xlu1 %v715_v27, %s1209_s28 }
 0x1ec   : > { %577 = vrot.lane.b32.xlu2 %v574_v4, %s1203_s23  ;;  %739 = vrot.lane.b32.xlu0 %v736_v31, %s1208_s27 }
 0x1ef   : > { %717 = vrot.lane.b32.xlu1 %v714_v28, %s1209_s28 }
 0x1f4   : > { %581 = vrot.lane.b32.xlu0 %v576_v6, %s1203_s23 }
 0x1f7   : > { %552 = vrot.lane.b32.xlu1 %v1453_v62, %s1202_s18  ;;  %s1143_s18 = scalar_lea.hbm %s1142_s21, 8 }
 0x1f8   : > { %p1144_p1 = scmp.ne.s32.totalorder %s1142_s21, %s1143_s18  ;;  %p1149_p2 = scmp.lt.s32.totalorder %s1147_s17, %s1143_s18 }
 0x1fa   : > { %p1145_p4 = pnand %p1144_p1, %p1296_p3  ;;  %p1150_p10 = por %p1149_p2, %p1148_p9 }
 0x1fc   : > { %p1146_p8 = pneg %p1145_p4 }
 0x1fe   : > { %v1486_v32 = vpop.permute.xlu2 %554  ;;  %p1151_p11 = pnand %p1150_p10, %p1146_p8 }
 0x206   : > { %v1488_v33 = vpop.permute.xlu2 %579 }
 0x20e   : > { %v602_v36 = vpop.permute.xlu2 %601 }
 0x217   : > { %v557_v34 = vpop.permute.xlu0 %556 }
 0x218   : > { %v559_v1 = vsel %vm267_vm0, %v1486_v32, %v557_v34 }
 0x219   : > { %v563_v35 = vsel %vm1385_vm1, %v559_v1, 0.0 }
 0x21a   : > { %565 = vst [vmem:[#allocation3] sm:$0xf] %v563_v35 }
 0x226   : > { %v600_v37 = vpop.permute.xlu1 %599  ;;  %v665_v38 = vpop.permute.xlu2 %664 }
 0x227   : > { %v604_v40 = vpop.permute.xlu0 %603  ;;  %v605_v41 = vsel %vm318_vm2, %v600_v37, %v602_v36 }
 0x228   : > { %v606_v44 = vsel %vm318_vm2, %v602_v36, %v604_v40  ;;  %v609_v39 = vsel %vm1393_vm3, %v605_v41, 0.0 }
 0x229   : > { %v610_v45 = vsel %vm1397_vm4, %v606_v44, 0.0  ;;  %611 = vst [vmem:[#allocation3 + $0x18] sm:$0xf] %v609_v39 }
 0x22a   : > { %612 = vst [vmem:[#allocation3 + $0x10] sm:$0xf] %v610_v45 }
 0x22e   : > { %v697_v46 = vpop.permute.xlu2 %696 }
 0x22f   : > { %v628_v47 = vpop.permute.xlu1 %627  ;;  %v626_v48 = vpop.permute.xlu0 %625 }
 0x230   : > { %v630_v50 = vsel %vm343_vm5, %v626_v48, %v628_v47 }
 0x231   : > { %v634_v52 = vsel %vm1385_vm1, %v630_v50, 0.0 }
 0x232   : > { %v638_v53 = vrot.slane %v634_v52, 4 }
 0x234   : > { %642 = vst [vmem:[#allocation3 + $0x10] sm:$0xf0] %v638_v53 }
 0x236   : > { %v663_v42 = vpop.permute.xlu2 %662 }
 0x237   : > { %v667_v54 = vpop.permute.xlu0 %666  ;;  %v624_v55 = vpop.permute.xlu1 %623  ;;  %v668_v56 = vsel %vm383_vm8, %v663_v42, %v665_v38 }
 0x238   : > { %v669_v57 = vsel %vm383_vm8, %v665_v38, %v667_v54  ;;  %v629_v58 = vsel %vm343_vm5, %v624_v55, %v626_v48  ;;  %v672_v59 = vsel %vm1393_vm3, %v668_v56, 0.0  ;;  %v766_v38 = vld.sshfl [vmem:[#allocation1] sm:$0xff pattern:$0x75316420] }
 0x239   : > { %v673_v60 = vsel %vm1397_vm4, %v669_v57, 0.0  ;;  %v633_v61 = vsel %vm1410_vm6, %v629_v58, 0.0  ;;  %v676_v62 = vrot.slane %v672_v59, 4 }
 0x23a   : > { %v677_v63 = vrot.slane %v673_v60, 4  ;;  %v637_v2 = vrot.slane %v633_v61, 4 }
 0x23b   : > { %680 = vst [vmem:[#allocation3 + $0x48] sm:$0xf0] %v676_v62  ;;  %v757_v25 = vld [vmem:[#allocation3 + $0x10] sm:$0xff] }
 0x23c   : > { %681 = vst [vmem:[#allocation3 + $0x28] sm:$0xf0] %v677_v63 }
 0x23d   : > { %641 = vst [vmem:[#allocation3 + $0x18] sm:$0xf0] %v637_v2 }
 0x23e   : > { %v722_v3 = vpop.permute.xlu2 %721 }
 0x242   : > { %v758_v31 = vld [vmem:[#allocation3 + $0x48] sm:$0xff] }
 0x243   : > { %v759_v23 = vld [vmem:[#allocation3 + $0x28] sm:$0xff] }
 0x244   : > { %v756_v34 = vld [vmem:[#allocation3 + $0x18] sm:$0xff] }
 0x246   : > { %v578_v4 = vpop.permute.xlu2 %577  ;;  %v695_v5 = vpop.permute.xlu1 %694 }
 0x247   : > { %v583_v6 = vsel %vm293_vm9, %v578_v4, %v1488_v33  ;;  %v699_v7 = vsel %vm414_vm7, %v695_v5, %v697_v46  ;;  %v693_v8 = vpop.permute.xlu0 %692 }
 0x248   : > { %587 = vst [vmem:[#allocation3 + $0x30] sm:$0xf0] %v583_v6  ;;  %v703_v9 = vsel %vm1385_vm1, %v699_v7, 0.0  ;;  %v698_v10 = vsel %vm414_vm7, %v693_v8, %v695_v5 }
 0x249   : > { %705 = vst [vmem:[#allocation3 + $0x20] sm:$0xf] %v703_v9  ;;  %v702_v11 = vsel %vm1410_vm6, %v698_v10, 0.0 }
 0x24a   : > { %704 = vst [vmem:[#allocation3 + $0x8] sm:$0xf] %v702_v11 }
 0x251   : > { %v744_v12 = vpop.permute.xlu1 %743 }
 0x256   : > { %v742_v13 = vpop.permute.xlu0 %741 }
 0x257   : > { %v746_v14 = vsel %vm463_vm11, %v742_v13, %v744_v12 }
 0x258   : > { %v750_v15 = vsel %vm1397_vm4, %v746_v14, 0.0 }
 0x259   : > { %v720_v16 = vpop.permute.xlu1 %719  ;;  %752 = vst [vmem:[#allocation3 + $0x38] sm:$0xf] %v750_v15 }
 0x25a   : > { %v724_v17 = vsel %vm440_vm10, %v720_v16, %v722_v3 }
 0x25b   : > { %728 = vst [vmem:[#allocation3 + $0x20] sm:$0xf0] %v724_v17 }
 0x25e   : > { %v740_v43 = vpop.permute.xlu0 %739 }
 0x25f   : > { %v745_v18 = vsel %vm463_vm11, %v740_v43, %v742_v13 }
 0x260   : > { %v749_v19 = vsel %vm1393_vm3, %v745_v18, 0.0  ;;  %v763_v20 = vld [vmem:[#allocation3 + $0x38] sm:$0xf] }
 0x261   : > { %v718_v21 = vpop.permute.xlu1 %717  ;;  %751 = vst [vmem:[#allocation3 + $0x40] sm:$0xf] %v749_v19  ;;  %952 = vmatpush.msk.msra.mxu3 %vm487_vm12, %v763_v20 }
 0x262   : > { %v723_v22 = vsel %vm440_vm10, %v718_v21, %v720_v16  ;;  %v761_v51 = vld [vmem:[#allocation3 + $0x20] sm:$0xff] }
 0x263   : > { %727 = vst [vmem:[#allocation3 + $0x8] sm:$0xf0] %v723_v22  ;;  %811 = vmatpush.msra.mxu3 %v761_v51 }
 0x265   : > { %812 = vmatpush.msra.mxu3 %v759_v23 }
 0x266   : > { %v582_v24 = vpop.permute.xlu0 %581 }
 0x267   : > { %v584_v26 = vsel %vm293_vm9, %v1488_v33, %v582_v24  ;;  %813 = vmatpush.msra.mxu3 %v757_v25  ;;  %v753_v33 = vld [vmem:[#allocation9] sm:$0xf] }
 0x268   : > { %588 = vst [vmem:[#allocation3] sm:$0xf0] %v584_v26  ;;  %v762_v49 = vld [vmem:[#allocation3 + $0x40] sm:$0xf] }
 0x269   : > { %v553_v27 = vpop.permute.xlu1 %552  ;;  %950 = vmatpush.msk.msra.mxu2 %vm487_vm12, %v762_v49 }
 0x26a   : > { %v558_v28 = vsel %vm267_vm0, %v553_v27, %v1486_v32  ;;  %v760_v29 = vld [vmem:[#allocation3 + $0x8] sm:$0xff]  ;;  %v767_v32 = vld.sshfl [vmem:[#allocation1 + $0x8] sm:$0xff pattern:$0x75316420] }
 0x26b   : > { %v562_v30 = vsel %vm1410_vm6, %v558_v28, 0.0  ;;  %791 = vmatpush.msra.mxu2 %v760_v29 }
 0x26c   : > { %564 = vst [vmem:[#allocation3 + $0x30] sm:$0xf] %v562_v30 }
 0x26d   : > { %792 = vmatpush.msra.mxu2 %v758_v31 }
 0x26f   : > { %793 = vmatpush.msra.mxu2 %v756_v34  ;;  %v755_v1 = vld [vmem:[#allocation3] sm:$0xff] }
 0x270   : > { %814 = vmatpush.msra.mxu3 %v755_v1 }
 0x271   : > { %953 = vmatmul.msk.f32.vlgmr.msra.gmra.mxu3 %vm483_vm13, %v753_v33 }
 0x273   : > { %v754_v35 = vld [vmem:[#allocation3 + $0x30] sm:$0xff] }
 0x274   : > { %794 = vmatpush.msra.mxu2 %v754_v35 }
 0x275   : > { %951 = vmatmul.msk.f32.vlgmr.msra.gmra.mxu2 %vm483_vm13, %v753_v33 }
 0x2f4   : > { %v816_v0 = vpop.f32.mrf.mxu3 }
 0x2f5   : > { %v817_v36 = vadd.f32 %v816_v0, %v767_v32 }
 0x2f7   : > { %v820_v37 = vmax.f32 %v817_v36, 0.0 }
 0x2f8   : > { %v796_v40 = vpop.f32.mrf.mxu2 }
 0x2f9   : > { %v823_v41 = vrot.slane %v820_v37, 4  ;;  %v797_v44 = vadd.f32 %v796_v40, %v766_v38 }
 0x2fb   : > { %v819_v39 = vmax.f32 %v797_v44, 0.0 }
 0x2fd   : > { %v824_v45 = vsel %vm487_vm12, %v819_v39, %v823_v41 }
 0x2fe   : > { %826 = vst [vmem:[%s217_s10] sm:$0xff] %v824_v45 }
 0x2ff   : > { %1154 = shalt.err (!%p1151_p11)
}
 0x300   : > { %971 = dma.vmem_to_hbm [thread:$0]  (%p1296_p3), %s842_s11, 128, %s844_s20, %s828_s16  }
 0x301 PF: > { %s855_s9 = sand.u32 1, %s1185_s12   ;;  %p1591_p12 = scmp.ge.s32.totalorder %s1197_s15, 2 }
 0x302   : > { %s856_s26 = scalar_lea.sflag [#allocation6], %s855_s9 }
 0x303   : > { %p985_p13 = pnand %p1591_p12, %p1265_p6 }
 0x305   : > { %p986_p0 = pneg %p985_p13 }
 0x307   : > { %1180 = dma.done.wait (%p986_p0), %s856_s26, 128  }
 0x308   : > { %1182 = vsyncadd (%p986_p0), %s856_s26, 4294967168  ;;  %p17_p5 = scmp.ge.s32.totalorder %s1286_s4, 4   ;;  %s1592_s12 = smov %s1189_s13 }
 0x309   : > { %s1593_s13 = smov %s1193_s14  ;;  %s1594_s14 = smov %s1302_s8 }
 0x30a   : > { %s1595_s15 = smov %s1286_s4  ;;  %19 = sbr.rel (!%p17_p5) target bundleno = 6 (0x6), region = 105 }
 0x30f   :  { %862 = vsyncpa [#allocation5], 1 }
 0x310   :  { %864 = vsyncpa [#allocation5 + $0x1], 1 }
 0x311   :  { %865 = vsyncpa [#allocation8], 1 }
 0x312   :  { %866 = vsyncpa [#allocation6], 1 }
 0x313   :  { %868 = vsyncpa [#allocation6 + $0x1], 1 }

</bundles_post_ra>
